<compile_context>
chip_gen: v7x
topology: tpu7x:2x2x1
jax: 0.10.0
libtpu: 0.0.40
codegen_flags: <defaults>
</compile_context>

<pallas_src>
import functools
import math

import jax
import jax.numpy as jnp
from jax.experimental import pallas as pl
from jax.experimental.pallas import tpu as pltpu


# --------------------------------------------------------------------------- #
# Kernel
# --------------------------------------------------------------------------- #
def rnn_fused_kernel(x_ref, w_ih_ref, b_rnn_ref, w_hh_ref,
                     w1_ref, b1_ref, w2_ref, b2_ref,
                     out_ref, h_scratch):
    """One grid step = one (batch_block, time_chunk) tile of the sequence."""
    t = pl.program_id(1)                      # time-chunk index (serial axis)
    cdt = w_hh_ref.dtype                      # matmul-input dtype (f32 or bf16)

    tc, bb, din = x_ref.shape                 # static Python ints
    rh = w_hh_ref.shape[0]

    # h_0 = 0 at the start of every batch block's time sweep.
    @pl.when(t == 0)
    def _():
        h_scratch[...] = jnp.zeros_like(h_scratch)

    # ---- Hoisted input projection: one chunk-sized GEMM on the MXU ---------
    # (tc*bb, D) @ (D, H) + b  — replaces `tc` tiny per-step matmuls.
    x_blk = x_ref[...].reshape(tc * bb, din)              # bb is a multiple of 8
    xp = jnp.dot(x_blk, w_ih_ref[...], preferred_element_type=jnp.float32)
    xp = xp + b_rnn_ref[...]                              # bias broadcast, once per chunk

    # ---- Serial recurrence: h carried in vregs, statically unrolled --------
    h = h_scratch[...]                                    # f32 (bb, H)
    w_hh = w_hh_ref[...]                                  # hoisted load
    for i in range(tc):                                   # tiny static trip count
        pre = xp[i * bb:(i + 1) * bb, :] + jnp.dot(
            h.astype(cdt), w_hh, preferred_element_type=jnp.float32)
        h = jnp.tanh(pre)                                 # EUP, f32
    h_scratch[...] = h                                    # one store per chunk

    # ---- MLP head + sigmoid only after the final time chunk ----------------
    @pl.when(t == pl.num_programs(1) - 1)
    def _():
        z = jnp.dot(h.astype(cdt), w1_ref[...],
                    preferred_element_type=jnp.float32) + b1_ref[...]
        z = jnp.maximum(z, 0.0)
        logits = jnp.dot(z.astype(cdt), w2_ref[...],
                         preferred_element_type=jnp.float32) + b2_ref[...]
        out_ref[...] = jax.nn.sigmoid(logits)             # lane-dense (bb, rO) store


# --------------------------------------------------------------------------- #
# Wrapper
# --------------------------------------------------------------------------- #
def _round_up(v, m):
    return (v + m - 1) // m * m


def _largest_divisor_leq(n, cap):
    cap = max(1, min(cap, n))
    for d in range(cap, 0, -1):
        if n % d == 0:
            return d
    return 1


def _batch_block(rb, cap):
    cap = max(8, min(cap, rb))
    cap -= cap % 8
    bb = cap
    while rb % bb:
        bb -= 8
    return bb


def simple_rnn_forward(x, params, *, time_chunk=8, batch_block=256,
                       compute_dtype=jnp.float32):
    """x: (B, T, D) float32 (batch_first, like PyTorch). Returns (B, O) float32.

    compute_dtype: dtype of matmul operands (weights, x, h-cast). Use
    jnp.bfloat16 on v6e/v7x for MXU throughput; keep float32 on v5e.
    """
    B, T, D = x.shape
    H = params["w_hh"].shape[0]
    H2 = params["w1"].shape[1]
    O = params["w2"].shape[1]

    # Hardware-tile padding: batch -> 8 sublanes, feature dims -> 128 lanes.
    rB = _round_up(B, 8)
    rH = _round_up(H, 128)
    rH2 = _round_up(H2, 128)
    rO = _round_up(O, 128)

    tc = _largest_divisor_leq(T, time_chunk)   # time-chunk size (divides T)
    bb = _batch_block(rB, batch_block)         # batch block (multiple of 8, divides rB)
    grid = (rB // bb, T // tc)                 # (parallel batch, serial time)

    # Zero-pad (exactly semantics-preserving: padded rows/cols contribute 0,
    # tanh(0)=0 keeps padded hidden lanes at 0) and lay x out time-major so the
    # streamed block's last two dims are full (rB, D).
    x_p = jnp.pad(x, ((0, rB - B), (0, 0), (0, 0))).astype(compute_dtype)
    x_tm = jnp.transpose(x_p, (1, 0, 2))                       # (T, rB, D)

    w_ih = jnp.pad(params["w_ih"], ((0, 0), (0, rH - H))).astype(compute_dtype)
    w_hh = jnp.pad(params["w_hh"], ((0, rH - H), (0, rH - H))).astype(compute_dtype)
    w1 = jnp.pad(params["w1"], ((0, rH - H), (0, rH2 - H2))).astype(compute_dtype)
    w2 = jnp.pad(params["w2"], ((0, rH2 - H2), (0, rO - O))).astype(compute_dtype)
    # Biases stay f32 (added to f32 accumulators).
    b_rnn = jnp.pad(params["b_rnn"], ((0, 0), (0, rH - H)))
    b1 = jnp.pad(params["b1"], ((0, 0), (0, rH2 - H2)))
    b2 = jnp.pad(params["b2"], ((0, 0), (0, rO - O)))

    # Explicit VMEM budget: resident weights + double-buffered x chunk + out +
    # scratch, with headroom; capped at 64 MiB (v7x physical VMEM per core).
    cbytes = jnp.dtype(compute_dtype).itemsize
    est = 2 * (tc * bb * D * cbytes                       # x chunk (double-buffered)
               + (D * rH + rH * rH + rH * rH2 + rH2 * rO) * cbytes
               + (rH + rH2 + rO) * 4
               + bb * rO * 4)
    est += bb * rH * 4                                    # h scratch
    vmem_limit = int(min(max(est + (4 << 20), 16 << 20), 64 << 20))

    def wspec(shape):                                     # resident weight spec
        return pl.BlockSpec(shape, lambda b, t: (0, 0))

    out_p = pl.pallas_call(
        rnn_fused_kernel,
        out_shape=jax.ShapeDtypeStruct((rB, rO), jnp.float32),
        grid=grid,
        in_specs=[
            pl.BlockSpec((tc, bb, D), lambda b, t: (t, b, 0)),  # x: streamed, pipelined
            wspec((D, rH)),      # w_ih
            wspec((1, rH)),      # b_ih + b_hh
            wspec((rH, rH)),     # w_hh
            wspec((rH, rH2)),    # w1
            wspec((1, rH2)),     # b1
            wspec((rH2, rO)),    # w2
            wspec((1, rO)),      # b2
        ],
        out_specs=pl.BlockSpec((bb, rO), lambda b, t: (b, 0)),
        scratch_shapes=[pltpu.VMEM((bb, rH), jnp.float32)],     # persistent h
        compiler_params=pltpu.CompilerParams(
            dimension_semantics=("parallel", "arbitrary"),
            vmem_limit_bytes=vmem_limit),
    )(x_tm, w_ih, b_rnn, w_hh, w1, b1, w2, b2)

    return out_p[:B, :O]


# --------------------------------------------------------------------------- #
# Params / reference
# --------------------------------------------------------------------------- #
def init_params(key, input_dim, hidden_dim, output_dim):
    """Deterministic init mirroring PyTorch default uniform ranges."""
    h2 = hidden_dim // 2
    ks = jax.random.split(key, 8)
    s_rnn = 1.0 / jnp.sqrt(hidden_dim)
    s_fc1 = 1.0 / jnp.sqrt(hidden_dim)
    s_fc2 = 1.0 / jnp.sqrt(h2)
    u = lambda k, shape, s: jax.random.uniform(k, shape, jnp.float32, -s, s)
    return {
        # RNN weights pre-transposed to (in, out); biases folded together.
        "w_ih": u(ks[0], (input_dim, hidden_dim), s_rnn),
        "w_hh": u(ks[1], (hidden_dim, hidden_dim), s_rnn),
        "b_rnn": (u(ks[2], (1, hidden_dim), s_rnn)
                  + u(ks[3], (1, hidden_dim), s_rnn)),   # b_ih + b_hh
        # MLP head.
        "w1": u(ks[4], (hidden_dim, h2), s_fc1),
        "b1": u(ks[5], (1, h2), s_fc1),
        "w2": u(ks[6], (h2, output_dim), s_fc2),
        "b2": u(ks[7], (1, output_dim), s_fc2),
    }


def reference_forward(x, p):
    """Pure-JAX reference for the correctness check."""
    B, T, D = x.shape
    H = p["w_hh"].shape[0]
    h = jnp.zeros((B, H), jnp.float32)
    for t in range(T):
        h = jnp.tanh(x[:, t, :] @ p["w_ih"] + h @ p["w_hh"] + p["b_rnn"])
    z = jnp.maximum(h @ p["w1"] + p["b1"], 0.0)
    return jax.nn.sigmoid(z @ p["w2"] + p["b2"])


if __name__ == "__main__":
    B, T, D, H, O = 2, 8, 16, 32, 4

    key = jax.random.PRNGKey(0)
    k_x, k_p = jax.random.split(key)
    x = jax.random.normal(k_x, (B, T, D), jnp.float32)
    params = init_params(k_p, D, H, O)

    # f32 path (exact check). time_chunk=4 -> 2 serial grid steps, exercising
    # the streamed recurrence and cross-chunk hidden-state carry.
    fwd_f32 = jax.jit(functools.partial(simple_rnn_forward, time_chunk=4))
    out = jax.block_until_ready(fwd_f32(x, params))
    ref = reference_forward(x, params)
    assert out.shape == (B, O)
    assert jnp.allclose(out, ref, atol=1e-5, rtol=1e-5)

    # bf16 matmul-input path (recommended on v6e/v7x); f32 accumulation keeps
    # the result close to the f32 reference.
    fwd_bf16 = jax.jit(functools.partial(simple_rnn_forward, time_chunk=4,
                                         compute_dtype=jnp.bfloat16))
    out_bf16 = jax.block_until_ready(fwd_bf16(x, params))
    assert jnp.allclose(out_bf16, ref, atol=2e-2, rtol=2e-2)

    print("KERNEL_OK")
</pallas_src>

<mosaic_0001>
module attributes {stable_mosaic.version = 11 : i64} {
  func.func @rnn_fused_kernel(%arg0: i32, %arg1: i32, %arg2: memref<4x8x16xf32, #tpu.memory_space<vmem>>, %arg3: memref<16x128xf32, #tpu.memory_space<vmem>>, %arg4: memref<1x128xf32, #tpu.memory_space<vmem>>, %arg5: memref<128x128xf32, #tpu.memory_space<vmem>>, %arg6: memref<128x128xf32, #tpu.memory_space<vmem>>, %arg7: memref<1x128xf32, #tpu.memory_space<vmem>>, %arg8: memref<128x128xf32, #tpu.memory_space<vmem>>, %arg9: memref<1x128xf32, #tpu.memory_space<vmem>>, %arg10: memref<8x128xf32, #tpu.memory_space<vmem>>, %arg11: memref<8x128xf32, #tpu.memory_space<vmem>>) attributes {dimension_semantics = [#tpu.dimension_semantics<parallel>, #tpu.dimension_semantics<arbitrary>], iteration_bounds = array<i64: 1, 2>, scalar_prefetch = 0 : i64, scratch_operands = 1 : i64, tpu.core_type = #tpu.core_type<tc>, window_params = [{transform_indices = @transform_0, window_bounds = array<i64: 4, 8, 16>}, {pipeline_mode = #tpu.pipeline_mode<synchronous>, transform_indices = @transform_1, window_bounds = array<i64: 16, 128>}, {pipeline_mode = #tpu.pipeline_mode<synchronous>, transform_indices = @transform_2, window_bounds = array<i64: 1, 128>}, {pipeline_mode = #tpu.pipeline_mode<synchronous>, transform_indices = @transform_3, window_bounds = array<i64: 128, 128>}, {pipeline_mode = #tpu.pipeline_mode<synchronous>, transform_indices = @transform_4, window_bounds = array<i64: 128, 128>}, {pipeline_mode = #tpu.pipeline_mode<synchronous>, transform_indices = @transform_5, window_bounds = array<i64: 1, 128>}, {pipeline_mode = #tpu.pipeline_mode<synchronous>, transform_indices = @transform_6, window_bounds = array<i64: 128, 128>}, {pipeline_mode = #tpu.pipeline_mode<synchronous>, transform_indices = @transform_7, window_bounds = array<i64: 1, 128>}, {transform_indices = @transform_8, window_bounds = array<i64: 8, 128>}]} {
    %c0_i32 = arith.constant 0 : i32
    %0 = arith.cmpi eq, %arg1, %c0_i32 : i32
    %1 = arith.extui %0 : i1 to i32
    %c0_i32_0 = arith.constant 0 : i32
    %2 = arith.cmpi ne, %1, %c0_i32_0 : i32
    scf.if %2 {
      %cst_18 = arith.constant 0.000000e+00 : f32
      %32 = vector.broadcast %cst_18 : f32 to vector<8x128xf32>
      %c0_19 = arith.constant 0 : index
      %c0_20 = arith.constant 0 : index
      %33 = vector.load %arg11[%c0_19, %c0_20] : memref<8x128xf32, #tpu.memory_space<vmem>>, vector<8x128xf32>
      tpu.vector_store %arg11[%c0_19, %c0_20], %32 {strides = array<i32>} : memref<8x128xf32, #tpu.memory_space<vmem>>, vector<8x128xf32>,
    } else {
    }
    %c0 = arith.constant 0 : index
    %c0_1 = arith.constant 0 : index
    %c0_2 = arith.constant 0 : index
    %3 = vector.load %arg2[%c0, %c0_1, %c0_2] : memref<4x8x16xf32, #tpu.memory_space<vmem>>, vector<4x8x16xf32>
    %4 = vector.shape_cast %3 : vector<4x8x16xf32> to vector<32x16xf32>
    %c0_3 = arith.constant 0 : index
    %c0_4 = arith.constant 0 : index
    %5 = vector.load %arg3[%c0_3, %c0_4] : memref<16x128xf32, #tpu.memory_space<vmem>>, vector<16x128xf32>
    %cst = arith.constant dense<0.000000e+00> : vector<32x128xf32>
    %6 = tpu.matmul %4, %5, %cst {dimension_numbers = #tpu.dot_dimension_numbers<[1], [0], [0], [1], [0, 0, 1, 1], [], []>} : vector<32x16xf32>, vector<16x128xf32>, vector<32x128xf32> -> vector<32x128xf32>
    %c0_5 = arith.constant 0 : index
    %c0_6 = arith.constant 0 : index
    %7 = vector.load %arg4[%c0_5, %c0_6] : memref<1x128xf32, #tpu.memory_space<vmem>>, vector<1x128xf32>
    %8 = vector.broadcast %7 : vector<1x128xf32> to vector<32x128xf32>
    %9 = arith.addf %6, %8 : vector<32x128xf32>
    %c0_7 = arith.constant 0 : index
    %c0_8 = arith.constant 0 : index
    %10 = vector.load %arg11[%c0_7, %c0_8] : memref<8x128xf32, #tpu.memory_space<vmem>>, vector<8x128xf32>
    %c0_9 = arith.constant 0 : index
    %c0_10 = arith.constant 0 : index
    %11 = vector.load %arg5[%c0_9, %c0_10] : memref<128x128xf32, #tpu.memory_space<vmem>>, vector<128x128xf32>
    %12 = vector.extract_strided_slice %9 {offsets = [0, 0], sizes = [8, 128], strides = [1, 1]} : vector<32x128xf32> to vector<8x128xf32>
    %cst_11 = arith.constant dense<0.000000e+00> : vector<8x128xf32>
    %13 = tpu.matmul %10, %11, %cst_11 {dimension_numbers = #tpu.dot_dimension_numbers<[1], [0], [0], [1], [0, 0, 1, 1], [], []>} : vector<8x128xf32>, vector<128x128xf32>, vector<8x128xf32> -> vector<8x128xf32>
    %14 = arith.addf %12, %13 : vector<8x128xf32>
    %15 = math.tanh %14 : vector<8x128xf32>
    %16 = vector.extract_strided_slice %9 {offsets = [8, 0], sizes = [8, 128], strides = [1, 1]} : vector<32x128xf32> to vector<8x128xf32>
    %cst_12 = arith.constant dense<0.000000e+00> : vector<8x128xf32>
    %17 = tpu.matmul %15, %11, %cst_12 {dimension_numbers = #tpu.dot_dimension_numbers<[1], [0], [0], [1], [0, 0, 1, 1], [], []>} : vector<8x128xf32>, vector<128x128xf32>, vector<8x128xf32> -> vector<8x128xf32>
    %18 = arith.addf %16, %17 : vector<8x128xf32>
    %19 = math.tanh %18 : vector<8x128xf32>
    %20 = vector.extract_strided_slice %9 {offsets = [16, 0], sizes = [8, 128], strides = [1, 1]} : vector<32x128xf32> to vector<8x128xf32>
    %cst_13 = arith.constant dense<0.000000e+00> : vector<8x128xf32>
    %21 = tpu.matmul %19, %11, %cst_13 {dimension_numbers = #tpu.dot_dimension_numbers<[1], [0], [0], [1], [0, 0, 1, 1], [], []>} : vector<8x128xf32>, vector<128x128xf32>, vector<8x128xf32> -> vector<8x128xf32>
    %22 = arith.addf %20, %21 : vector<8x128xf32>
    %23 = math.tanh %22 : vector<8x128xf32>
    %24 = vector.extract_strided_slice %9 {offsets = [24, 0], sizes = [8, 128], strides = [1, 1]} : vector<32x128xf32> to vector<8x128xf32>
    %cst_14 = arith.constant dense<0.000000e+00> : vector<8x128xf32>
    %25 = tpu.matmul %23, %11, %cst_14 {dimension_numbers = #tpu.dot_dimension_numbers<[1], [0], [0], [1], [0, 0, 1, 1], [], []>} : vector<8x128xf32>, vector<128x128xf32>, vector<8x128xf32> -> vector<8x128xf32>
    %26 = arith.addf %24, %25 : vector<8x128xf32>
    %27 = math.tanh %26 : vector<8x128xf32>
    %c0_15 = arith.constant 0 : index
    %c0_16 = arith.constant 0 : index
    %28 = vector.load %arg11[%c0_15, %c0_16] : memref<8x128xf32, #tpu.memory_space<vmem>>, vector<8x128xf32>
    tpu.vector_store %arg11[%c0_15, %c0_16], %27 {strides = array<i32>} : memref<8x128xf32, #tpu.memory_space<vmem>>, vector<8x128xf32>,
    %c1_i32 = arith.constant 1 : i32
    %29 = arith.cmpi eq, %arg1, %c1_i32 : i32
    %30 = arith.extui %29 : i1 to i32
    %c0_i32_17 = arith.constant 0 : i32
    %31 = arith.cmpi ne, %30, %c0_i32_17 : i32
    scf.if %31 {
      %c0_18 = arith.constant 0 : index
      %c0_19 = arith.constant 0 : index
      %32 = vector.load %arg6[%c0_18, %c0_19] : memref<128x128xf32, #tpu.memory_space<vmem>>, vector<128x128xf32>
      %cst_20 = arith.constant dense<0.000000e+00> : vector<8x128xf32>
      %33 = tpu.matmul %27, %32, %cst_20 {dimension_numbers = #tpu.dot_dimension_numbers<[1], [0], [0], [1], [0, 0, 1, 1], [], []>} : vector<8x128xf32>, vector<128x128xf32>, vector<8x128xf32> -> vector<8x128xf32>
      %c0_21 = arith.constant 0 : index
      %c0_22 = arith.constant 0 : index
      %34 = vector.load %arg7[%c0_21, %c0_22] : memref<1x128xf32, #tpu.memory_space<vmem>>, vector<1x128xf32>
      %35 = vector.broadcast %34 : vector<1x128xf32> to vector<8x128xf32>
      %36 = arith.addf %33, %35 : vector<8x128xf32>
      %cst_23 = arith.constant 0.000000e+00 : f32
      %37 = vector.broadcast %cst_23 : f32 to vector<8x128xf32>
      %38 = arith.maximumf %36, %37 : vector<8x128xf32>
      %c0_24 = arith.constant 0 : index
      %c0_25 = arith.constant 0 : index
      %39 = vector.load %arg8[%c0_24, %c0_25] : memref<128x128xf32, #tpu.memory_space<vmem>>, vector<128x128xf32>
      %cst_26 = arith.constant dense<0.000000e+00> : vector<8x128xf32>
      %40 = tpu.matmul %38, %39, %cst_26 {dimension_numbers = #tpu.dot_dimension_numbers<[1], [0], [0], [1], [0, 0, 1, 1], [], []>} : vector<8x128xf32>, vector<128x128xf32>, vector<8x128xf32> -> vector<8x128xf32>
      %c0_27 = arith.constant 0 : index
      %c0_28 = arith.constant 0 : index
      %41 = vector.load %arg9[%c0_27, %c0_28] : memref<1x128xf32, #tpu.memory_space<vmem>>, vector<1x128xf32>
      %42 = vector.broadcast %41 : vector<1x128xf32> to vector<8x128xf32>
      %43 = arith.addf %40, %42 : vector<8x128xf32>
      %44 = arith.negf %43 : vector<8x128xf32>
      %45 = math.exp %44 : vector<8x128xf32>
      %cst_29 = arith.constant 1.000000e+00 : f32
      %46 = vector.broadcast %cst_29 : f32 to vector<8x128xf32>
      %47 = arith.addf %46, %45 : vector<8x128xf32>
      %48 = arith.divf %46, %47 : vector<8x128xf32>
      %c0_30 = arith.constant 0 : index
      %c0_31 = arith.constant 0 : index
      %49 = vector.load %arg10[%c0_30, %c0_31] : memref<8x128xf32, #tpu.memory_space<vmem>>, vector<8x128xf32>
      tpu.vector_store %arg10[%c0_30, %c0_31], %48 {strides = array<i32>} : memref<8x128xf32, #tpu.memory_space<vmem>>, vector<8x128xf32>,
    } else {
    }
    return
  }
  func.func @transform_0(%arg0: i32, %arg1: i32) -> (i32, i32, i32) {
    %c0_i32 = arith.constant 0 : i32
    %c0_i32_0 = arith.constant 0 : i32
    return %arg1, %arg0, %c0_i32 : i32, i32, i32
  }
  func.func @transform_1(%arg0: i32, %arg1: i32) -> (i32, i32) {
    %c0_i32 = arith.constant 0 : i32
    %c0_i32_0 = arith.constant 0 : i32
    %c0_i32_1 = arith.constant 0 : i32
    return %c0_i32, %c0_i32_0 : i32, i32
  }
  func.func @transform_2(%arg0: i32, %arg1: i32) -> (i32, i32) {
    %c0_i32 = arith.constant 0 : i32
    %c0_i32_0 = arith.constant 0 : i32
    %c0_i32_1 = arith.constant 0 : i32
    return %c0_i32, %c0_i32_0 : i32, i32
  }
  func.func @transform_3(%arg0: i32, %arg1: i32) -> (i32, i32) {
    %c0_i32 = arith.constant 0 : i32
    %c0_i32_0 = arith.constant 0 : i32
    %c0_i32_1 = arith.constant 0 : i32
    return %c0_i32, %c0_i32_0 : i32, i32
  }
  func.func @transform_4(%arg0: i32, %arg1: i32) -> (i32, i32) {
    %c0_i32 = arith.constant 0 : i32
    %c0_i32_0 = arith.constant 0 : i32
    %c0_i32_1 = arith.constant 0 : i32
    return %c0_i32, %c0_i32_0 : i32, i32
  }
  func.func @transform_5(%arg0: i32, %arg1: i32) -> (i32, i32) {
    %c0_i32 = arith.constant 0 : i32
    %c0_i32_0 = arith.constant 0 : i32
    %c0_i32_1 = arith.constant 0 : i32
    return %c0_i32, %c0_i32_0 : i32, i32
  }
  func.func @transform_6(%arg0: i32, %arg1: i32) -> (i32, i32) {
    %c0_i32 = arith.constant 0 : i32
    %c0_i32_0 = arith.constant 0 : i32
    %c0_i32_1 = arith.constant 0 : i32
    return %c0_i32, %c0_i32_0 : i32, i32
  }
  func.func @transform_7(%arg0: i32, %arg1: i32) -> (i32, i32) {
    %c0_i32 = arith.constant 0 : i32
    %c0_i32_0 = arith.constant 0 : i32
    %c0_i32_1 = arith.constant 0 : i32
    return %c0_i32, %c0_i32_0 : i32, i32
  }
  func.func @transform_8(%arg0: i32, %arg1: i32) -> (i32, i32) {
    %c0_i32 = arith.constant 0 : i32
    %c0_i32_0 = arith.constant 0 : i32
    return %arg0, %c0_i32 : i32, i32
  }
}

</mosaic_0001>

<bundles_post_ra>
// kernel: simple_rnn_forward.1
= control target key start
LH: loop header
LB: loop body
LE: loop exit
PB: predicated region body
PF: predicated region fallthrough
CT: control target
= control target key end

     0   :  { %s1625_s27 = smov 0   ;;  %s1627_s28 = smov 0   ;;  %s1934_s0 = inlined_call_operand.vmem [shape: f32[8,8,16], index: 0, kind: input, shape index: {}]   ;;  %s1935_s1 = inlined_call_operand.vmem [shape: f32[16,128], index: 1, kind: input, shape index: {}]   ;;  %s1936_s2 = inlined_call_operand.vmem [shape: f32[1,128], index: 2, kind: input, shape index: {}]   ;;  %s1937_s3 = inlined_call_operand.vmem [shape: f32[128,128], index: 3, kind: input, shape index: {}]   ;;  %s1938_s4 = inlined_call_operand.vmem [shape: f32[128,128], index: 4, kind: input, shape index: {}]   ;;  %s1939_s5 = inlined_call_operand.vmem [shape: f32[1,128], index: 5, kind: input, shape index: {}]   ;;  %s1940_s6 = inlined_call_operand.vmem [shape: f32[128,128], index: 6, kind: input, shape index: {}]   ;;  %s1941_s7 = inlined_call_operand.vmem [shape: f32[1,128], index: 7, kind: input, shape index: {}]   ;;  %s1942_s8 = inlined_call_operand.vmem [shape: f32[8,128], index: 8, kind: output, shape index: {}]  }
   0x1   :  { %s1629_s29 = smov 0  }
   0x2 LB: > { %s27_s30 = sadd.s32 1, %s1567_s28  ;;  %p1014_p0 = scmp.ge.s32.totalorder %s1571_s29, 1  ;;  %s1571_s29 = sphi %s1629_s29, %s18_s29   ;;  %s1567_s28 = sphi %s1627_s28, %s1944_s28   ;;  %s1563_s27 = sphi %s1625_s27, %s1943_s27  }
   0x3   : > { %p28_p1 = scmp.ge.s32.totalorder %s27_s30, 2  ;;  %p280_p2 = scmp.lt.s32.totalorder %s1571_s29, 3 }
   0x5   : > { %s1946_s30 = smov (%p28_p1, %s27_s30), 0  ;;  %p281_p3 = pnand %p1014_p0, %p280_p2 }
   0x6   : > { %s1015_s9 = sshll.u32 (!%p281_p3), %s1563_s27, 2  ;;  %p1017_p5 = scmp.ne.s32.totalorder (!%p281_p3), %s1563_s27, 0 }
   0x7   : > { %284 = sbr.rel (%p281_p3) target bundleno = 1412 (0x584), region = 52  ;;  %p317_p4 = scmp.lt.s32.totalorder (!%p281_p3), %s1015_s9, 7 }
   0xe   : > { %s1948_s9 = smov (!%p317_p4, %s1015_s9), 7  ;;  %332 = sbr.rel (%p1017_p5) target bundleno = 21 (0x15), region = 56 }
   0xf   : > { %s1016_s10 = sshll.u32 %s1948_s9, 3  ;;  %v1573_v0 = vmov (!%p1017_p5), 0.0  }
  0x10   : > { %s1649_s13 = scalar_lea.vmem %s1934_s0, %s1016_s10  ;;  %333 = vst [vmem:[#allocation2] sm:$0xff] (!%p1017_p5), %v1573_v0 }
  0x15 PF: > { %v446_v1 = vld [vmem:[%s1937_s3] sm:$0xff]  ;;  %v447_v2 = vld [vmem:[%s1937_s3 + $0x8] sm:$0xff]  ;;  %v448_v3 = vld [vmem:[%s1937_s3 + $0x10] sm:$0xff]  ;;  %v1574_v4 = vmov 0.0|0.0   ;;  %vm1575_vm0 = vmmov 0   ;;  %v1576_v7 = vmov 0.0  }
  0x16   : > { %1362 = vmatprep.subr.bf16.mxu1 %v1574_v4  ;;  %v1662_v5 = vpack.c.bf16 %v447_v2, %v446_v1  ;;  %v449_v6 = vld [vmem:[%s1937_s3 + $0x18] sm:$0xff]  ;;  %1180 = vmatprep.mubr.msk.f32.mxu1 %vm1575_vm0, %v1576_v7  ;;  %v450_v9 = vld [vmem:[%s1937_s3 + $0x20] sm:$0xff]  ;;  %vm347_vm1 = vcmask 130048   ;;  %v451_v10 = vld [vmem:[%s1937_s3 + $0x28] sm:$0xff]  ;;  %p1023_p6 = scmp.ne.s32.totalorder %s1563_s27, 1 }
  0x17   : > { %v1670_v8 = vpack.c.bf16 %v449_v6, %v448_v3  ;;  %v338_v11 = vld [vmem:[%s1935_s1] sm:$0xff]  ;;  %v339_v12 = vld [vmem:[%s1935_s1 + $0x8] sm:$0xff]  ;;  %v1688_v15 = vpack.c.bf16 %v451_v10, %v450_v9  ;;  %v452_v16 = vld [vmem:[%s1937_s3 + $0x30] sm:$0xff]  ;;  %v1577_v63 = vmov (!%p1023_p6), 0.0|0.0   ;;  %vm1578_vm2 = vmmov (!%p1023_p6), 0  }
  0x18   : > { %1364 = vmatpush3.bf16.msra.mxu1 %v1662_v5  ;;  %v1358_v13 = vpack.c.bf16 %v339_v12, %v338_v11  ;;  %v334_v14 = vld [vmem:[%s1649_s13] sm:$0xff]  ;;  %v453_v17 = vld [vmem:[%s1937_s3 + $0x38] sm:$0xff]  ;;  %v335_v18 = vld [vmem:[%s1649_s13 + $0x8] sm:$0xff]  ;;  %v1579_v2 = vmov (!%p1023_p6), 0.0  }
  0x19   : > { %1365 = vmatprep.subr.bf16.mxu1 %v1574_v4  ;;  %1142 = vmatprep.mubr.msk.f32.mxu0 %vm347_vm1, %v334_v14  ;;  %v1700_v19 = vpack.c.bf16 %v453_v17, %v452_v16  ;;  %v454_v20 = vld [vmem:[%s1937_s3 + $0x40] sm:$0xff]  ;;  %v455_v21 = vld [vmem:[%s1937_s3 + $0x48] sm:$0xff]  ;;  %v456_v23 = vld [vmem:[%s1937_s3 + $0x50] sm:$0xff] }
  0x1a   : > { %1359 = vmatprep.subr.bf16.mxu0 %v1358_v13  ;;  %v1713_v22 = vpack.c.bf16 %v455_v21, %v454_v20  ;;  %v457_v24 = vld [vmem:[%s1937_s3 + $0x58] sm:$0xff]  ;;  %v458_v26 = vld [vmem:[%s1937_s3 + $0x60] sm:$0xff]  ;;  %v459_v27 = vld [vmem:[%s1937_s3 + $0x68] sm:$0xff] }
  0x1b   : > { %1361 = vmatpush3.bf16.msra.mxu0 %v1358_v13  ;;  %v1725_v25 = vpack.c.bf16 %v457_v24, %v456_v23  ;;  %v1737_v28 = vpack.c.bf16 %v459_v27, %v458_v26  ;;  %v460_v29 = vld [vmem:[%s1937_s3 + $0x70] sm:$0xff]  ;;  %v461_v30 = vld [vmem:[%s1937_s3 + $0x78] sm:$0xff]  ;;  %v445_v32 = vld [vmem:[#allocation2] sm:$0xff] }
  0x1c   : > { %1367 = vmatpush3.bf16.msra.mxu1 %v1670_v8  ;;  %1386 = vmatprep.subr.bf16.mxu0 %v1574_v4  ;;  %v1384_v31 = vpack.c.bf16 %v461_v30, %v460_v29  ;;  %v336_v33 = vld [vmem:[%s1649_s13 + $0x10] sm:$0xff]  ;;  %v337_v34 = vld [vmem:[%s1649_s13 + $0x18] sm:$0xff]  ;;  %v1018_v37 = vld [vmem:[%s1936_s2] ss:$0 sm:$0xff] }
  0x1d   : > { %1368 = vmatprep.subr.bf16.mxu1 %v1574_v4  ;;  %v755_v60 = vld [vmem:[%s1938_s4] sm:$0xff] (!%p1023_p6)  ;;  %v756_v61 = vld [vmem:[%s1938_s4 + $0x8] sm:$0xff] (!%p1023_p6)  ;;  %v757_v62 = vld [vmem:[%s1938_s4 + $0x10] sm:$0xff] (!%p1023_p6) }
  0x1e   : > { %1143 = vmatmul.mubr.msk.f32.vlgmr.msra.gmra.mrb[0].mxu0 %vm347_vm1, %v335_v18  ;;  %v1459_v0 = vpack.c.bf16 (!%p1023_p6), %v756_v61, %v755_v60  ;;  %v758_v1 = vld [vmem:[%s1938_s4 + $0x18] sm:$0xff] (!%p1023_p6)  ;;  %v849_v6 = vld [vmem:[%s1940_s6] sm:$0xff] (!%p1023_p6)  ;;  %v851_v9 = vld [vmem:[%s1940_s6 + $0x10] sm:$0xff] (!%p1023_p6) }
  0x1f   : > { %1388 = vmatpush3.bf16.msra.mxu0 %v1662_v5  ;;  %1145 = vmatprep.mubr.msk.f32.mxu0 %vm347_vm1, %v336_v33  ;;  %v1462_v3 = vpack.c.bf16 (!%p1023_p6), %v758_v1, %v757_v62  ;;  %v852_v10 = vld [vmem:[%s1940_s6 + $0x18] sm:$0xff] (!%p1023_p6)  ;;  %v761_v12 = vld [vmem:[%s1938_s4 + $0x30] sm:$0xff] (!%p1023_p6)  ;;  %v854_v16 = vld [vmem:[%s1940_s6 + $0x28] sm:$0xff] (!%p1023_p6) }
  0x20   : > { %1370 = vmatpush3.bf16.msra.mxu1 %v1688_v15  ;;  %1389 = vmatprep.subr.bf16.mxu0 %v1574_v4  ;;  %v762_v13 = vld [vmem:[%s1938_s4 + $0x38] sm:$0xff] (!%p1023_p6)  ;;  %v1486_v14 = vpack.c.bf16 (!%p1023_p6), %v852_v10, %v851_v9  ;;  %v763_v18 = vld [vmem:[%s1938_s4 + $0x40] sm:$0xff] (!%p1023_p6)  ;;  %v855_v21 = vld [vmem:[%s1940_s6 + $0x30] sm:$0xff] (!%p1023_p6) }
  0x21   : > { %1371 = vmatprep.subr.bf16.mxu1 %v1574_v4  ;;  %v1468_v17 = vpack.c.bf16 (!%p1023_p6), %v762_v13, %v761_v12  ;;  %v765_v24 = vld [vmem:[%s1938_s4 + $0x50] sm:$0xff] (!%p1023_p6)  ;;  %v857_v27 = vld [vmem:[%s1940_s6 + $0x40] sm:$0xff] (!%p1023_p6) }
  0x22   : > { %1146 = vmatmul.mubr.msk.f32.gmra.mrb[2].mxu0 %vm347_vm1, %v337_v34  ;;  %v767_v30 = vld [vmem:[%s1938_s4 + $0x60] sm:$0xff] (!%p1023_p6)  ;;  %v859_v33 = vld [vmem:[%s1940_s6 + $0x50] sm:$0xff] (!%p1023_p6)  ;;  %v860_v34 = vld [vmem:[%s1940_s6 + $0x58] sm:$0xff] (!%p1023_p6) }
  0x23   : > { %1391 = vmatpush3.bf16.msra.mxu0 %v1670_v8  ;;  %1215 = vmatprep.mubr.msk.f32.mxu0 %vm1575_vm0, %v1576_v7 }
  0x24   : > { %1373 = vmatpush3.bf16.msra.mxu1 %v1700_v19  ;;  %1392 = vmatprep.subr.bf16.mxu0 %v1574_v4 }
  0x25   : > { %1374 = vmatprep.subr.bf16.mxu1 %v1574_v4 }
  0x27   : > { %1394 = vmatpush3.bf16.msra.mxu0 %v1688_v15 }
  0x28   : > { %1376 = vmatpush3.bf16.msra.mxu1 %v1713_v22  ;;  %1395 = vmatprep.subr.bf16.mxu0 %v1574_v4 }
  0x29   : > { %1377 = vmatprep.subr.bf16.mxu1 %v1574_v4 }
  0x2b   : > { %1397 = vmatpush3.bf16.msra.mxu0 %v1700_v19 }
  0x2c   : > { %1379 = vmatpush3.bf16.msra.mxu1 %v1725_v25  ;;  %1398 = vmatprep.subr.bf16.mxu0 %v1574_v4 }
  0x2d   : > { %1380 = vmatprep.subr.bf16.mxu1 %v1574_v4 }
  0x2f   : > { %1400 = vmatpush3.bf16.msra.mxu0 %v1713_v22 }
  0x30   : > { %1382 = vmatpush3.bf16.msra.mxu1 %v1737_v28  ;;  %1401 = vmatprep.subr.bf16.mxu0 %v1574_v4 }
  0x31   : > { %1383 = vmatprep.subr.bf16.mxu1 %v1574_v4 }
  0x33   : > { %1403 = vmatpush3.bf16.msra.mxu0 %v1725_v25 }
  0x34   : > { %1385 = vmatpush3.bf16.msra.mxu1 %v1384_v31  ;;  %1404 = vmatprep.subr.bf16.mxu0 %v1574_v4 }
  0x35   : > { %1410 = vmatprep.subr.bf16.mxu1 %v1574_v4 }
  0x37   : > { %1181 = vmatmul.mubr.f32.vlgmr.msra.gmra.mrb[0].mxu1 %v445_v32  ;;  %1406 = vmatpush3.bf16.msra.mxu0 %v1737_v28 }
  0x38   : > { %1412 = vmatpush3.bf16.msra.mxu1 %v1662_v5  ;;  %1250 = vmatprep.mubr.msk.f32.mxu1 %vm1575_vm0, %v1576_v7 }
  0x39   : > { %1413 = vmatprep.subr.bf16.mxu1 %v1574_v4  ;;  %1407 = vmatprep.subr.bf16.mxu0 %v1574_v4 }
  0x3b   : > { %1409 = vmatpush3.bf16.msra.mxu0 %v1384_v31 }
  0x3c   : > { %1415 = vmatpush3.bf16.msra.mxu1 %v1670_v8  ;;  %1434 = vmatprep.subr.bf16.mxu0 %v1574_v4 }
  0x3d   : > { %1416 = vmatprep.subr.bf16.mxu1 %v1574_v4 }
  0x40   : > { %1418 = vmatpush3.bf16.msra.mxu1 %v1688_v15 }
  0x41   : > { %1419 = vmatprep.subr.bf16.mxu1 %v1574_v4 }
  0x44   : > { %1421 = vmatpush3.bf16.msra.mxu1 %v1700_v19 }
  0x45   : > { %1422 = vmatprep.subr.bf16.mxu1 %v1574_v4 }
  0x48   : > { %1424 = vmatpush3.bf16.msra.mxu1 %v1713_v22 }
  0x49   : > { %1425 = vmatprep.subr.bf16.mxu1 %v1574_v4 }
  0x4c   : > { %1427 = vmatpush3.bf16.msra.mxu1 %v1725_v25 }
  0x4d   : > { %1428 = vmatprep.subr.bf16.mxu1 %v1574_v4 }
  0x50   : > { %1430 = vmatpush3.bf16.msra.mxu1 %v1737_v28 }
  0x51   : > { %1431 = vmatprep.subr.bf16.mxu1 %v1574_v4 }
  0x54   : > { %1433 = vmatpush3.bf16.msra.mxu1 %v1384_v31 }
  0x55   : > { %1482 = vmatprep.subr.bf16.mxu1 (!%p1023_p6), %v1577_v63 }
  0xf1   : > { %v1144_v35 = vpop.f32.mrb[0].mxu0 }
  0xf2   : > { %v426_v36 = vpop.f32.mrb[1].mxu0  ;;  %v432_v45 = vadd.f32 %v1144_v35, %v1018_v37 }
  0xf3   : > { %v427_v38 = vadd.f32 %v1018_v37, %v426_v36  ;;  %v769_v36 = vld [vmem:[%s1938_s4 + $0x70] sm:$0xff] (!%p1023_p6) }
  0xf5   : > { %v1147_v43 = vpop.f32.mrb[2].mxu0 }
  0xf6   : > { %v436_v44 = vpop.f32.mrb[3].mxu0  ;;  %v442_v55 = vadd.f32 %v1147_v43, %v1018_v37  ;;  %v863_v43 = vld [vmem:[%s1940_s6 + $0x70] sm:$0xff] (!%p1023_p6) }
  0xf7   : > { %v437_v50 = vadd.f32 %v1018_v37, %v436_v44  ;;  %v770_v37 = vld [vmem:[%s1938_s4 + $0x78] sm:$0xff] (!%p1023_p6) }
  0xf8   : > { %v864_v44 = vld [vmem:[%s1940_s6 + $0x78] sm:$0xff] (!%p1023_p6) }
 0x10a   : > { %v528_v39 = vpop.f32.mrb[0].mxu1 }
 0x10b   : > { %v532_v40 = vadd.f32 %v528_v39, %v427_v38  ;;  %v1182_v41 = vpop.f32.mrb[1].mxu1  ;;  %v1498_v38 = vpack.c.bf16 (!%p1023_p6), %v860_v34, %v859_v33  ;;  %v861_v39 = vld [vmem:[%s1940_s6 + $0x60] sm:$0xff] (!%p1023_p6) }
 0x10c   : > { %v1480_v41 = vpack.c.bf16 (!%p1023_p6), %v770_v37, %v769_v36 }
 0x10d   : > { %1537 = vtanh.f32 %v532_v40  ;;  %v862_v40 = vld [vmem:[%s1940_s6 + $0x68] sm:$0xff] (!%p1023_p6) }
 0x117   : > { %v1538_v42 = vpop.eup %1537 }
 0x118   : > { %1216 = vmatmul.mubr.f32.vlgmr.msra.gmra.mrb[4].mxu0 %v1538_v42  ;;  %v1501_v42 = vpack.c.bf16 (!%p1023_p6), %v862_v40, %v861_v39 }
 0x119   : > { %1436 = vmatpush3.bf16.msra.mxu0 %v1662_v5  ;;  %1285 = vmatprep.mubr.msk.f32.mxu0 %vm1575_vm0, %v1576_v7  ;;  %v760_v5 = vld [vmem:[%s1938_s4 + $0x28] sm:$0xff] (!%p1023_p6) }
 0x11a   : > { %1437 = vmatprep.subr.bf16.mxu0 %v1574_v4  ;;  %v850_v7 = vld [vmem:[%s1940_s6 + $0x8] sm:$0xff] (!%p1023_p6) }
 0x11d   : > { %1439 = vmatpush3.bf16.msra.mxu0 %v1670_v8  ;;  %v1483_v8 = vpack.c.bf16 (!%p1023_p6), %v850_v7, %v849_v6 }
 0x11e   : > { %1440 = vmatprep.subr.bf16.mxu0 %v1574_v4 }
 0x121   : > { %1442 = vmatpush3.bf16.msra.mxu0 %v1688_v15  ;;  %v853_v15 = vld [vmem:[%s1940_s6 + $0x20] sm:$0xff] (!%p1023_p6) }
 0x122   : > { %1443 = vmatprep.subr.bf16.mxu0 %v1574_v4  ;;  %v1489_v20 = vpack.c.bf16 (!%p1023_p6), %v854_v16, %v853_v15 }
 0x125   : > { %1445 = vmatpush3.bf16.msra.mxu0 %v1700_v19  ;;  %v764_v19 = vld [vmem:[%s1938_s4 + $0x48] sm:$0xff] (!%p1023_p6) }
 0x126   : > { %1446 = vmatprep.subr.bf16.mxu0 %v1574_v4  ;;  %v1471_v23 = vpack.c.bf16 (!%p1023_p6), %v764_v19, %v763_v18 }
 0x129   : > { %1448 = vmatpush3.bf16.msra.mxu0 %v1713_v22  ;;  %v856_v22 = vld [vmem:[%s1940_s6 + $0x38] sm:$0xff] (!%p1023_p6) }
 0x12a   : > { %1449 = vmatprep.subr.bf16.mxu0 %v1574_v4  ;;  %v1492_v26 = vpack.c.bf16 (!%p1023_p6), %v856_v22, %v855_v21 }
 0x12d   : > { %1451 = vmatpush3.bf16.msra.mxu0 %v1725_v25  ;;  %v766_v25 = vld [vmem:[%s1938_s4 + $0x58] sm:$0xff] (!%p1023_p6) }
 0x12e   : > { %1452 = vmatprep.subr.bf16.mxu0 %v1574_v4  ;;  %v1474_v29 = vpack.c.bf16 (!%p1023_p6), %v766_v25, %v765_v24 }
 0x131   : > { %1454 = vmatpush3.bf16.msra.mxu0 %v1737_v28  ;;  %v858_v28 = vld [vmem:[%s1940_s6 + $0x48] sm:$0xff] (!%p1023_p6) }
 0x132   : > { %1455 = vmatprep.subr.bf16.mxu0 %v1574_v4  ;;  %v759_v4 = vld [vmem:[%s1938_s4 + $0x20] sm:$0xff] (!%p1023_p6)  ;;  %v1495_v32 = vpack.c.bf16 (!%p1023_p6), %v858_v28, %v857_v27 }
 0x133   : > { %v1465_v11 = vpack.c.bf16 (!%p1023_p6), %v760_v5, %v759_v4 }
 0x135   : > { %1457 = vmatpush3.bf16.msra.mxu0 %v1384_v31  ;;  %v768_v31 = vld [vmem:[%s1938_s4 + $0x68] sm:$0xff] (!%p1023_p6) }
 0x136   : > { %1458 = vmatprep.subr.bf16.mxu0 (!%p1023_p6), %v1577_v63  ;;  %v1477_v35 = vpack.c.bf16 (!%p1023_p6), %v768_v31, %v767_v30 }
 0x1eb   : > { %v600_v46 = vpop.f32.mrb[4].mxu0 }
 0x1ec   : > { %v604_v47 = vadd.f32 %v600_v46, %v432_v45  ;;  %v1217_v48 = vpop.f32.mrb[5].mxu0  ;;  %v1504_v45 = vpack.c.bf16 (!%p1023_p6), %v864_v44, %v863_v43  ;;  %v1024_v46 = vld [vmem:[%s1939_s5] ss:$0 sm:$0xff] (!%p1023_p6) }
 0x1ee   : > { %1539 = vtanh.f32 %v604_v47 }
 0x1f8   : > { %v1540_v49 = vpop.eup %1539 }
 0x1f9   : > { %1251 = vmatmul.mubr.f32.vlgmr.msra.gmra.mrb[2].mxu1 %v1540_v49 }
 0x1fa   : > { %1355 = vmatprep.mubr.msk.f32.mxu1 (!%p1023_p6), %vm1578_vm2, %v1579_v2  ;;  %1484 = vmatpush3.bf16.msra.mxu1 (!%p1023_p6), %v1483_v8 }
 0x1fb   : > { %1485 = vmatprep.subr.bf16.mxu1 (!%p1023_p6), %v1577_v63 }
 0x1fe   : > { %1487 = vmatpush3.bf16.msra.mxu1 (!%p1023_p6), %v1486_v14 }
 0x1ff   : > { %1488 = vmatprep.subr.bf16.mxu1 (!%p1023_p6), %v1577_v63 }
 0x202   : > { %1490 = vmatpush3.bf16.msra.mxu1 (!%p1023_p6), %v1489_v20 }
 0x203   : > { %1491 = vmatprep.subr.bf16.mxu1 (!%p1023_p6), %v1577_v63 }
 0x206   : > { %1493 = vmatpush3.bf16.msra.mxu1 (!%p1023_p6), %v1492_v26 }
 0x207   : > { %1494 = vmatprep.subr.bf16.mxu1 (!%p1023_p6), %v1577_v63 }
 0x20a   : > { %1496 = vmatpush3.bf16.msra.mxu1 (!%p1023_p6), %v1495_v32 }
 0x20b   : > { %1497 = vmatprep.subr.bf16.mxu1 (!%p1023_p6), %v1577_v63 }
 0x20e   : > { %1499 = vmatpush3.bf16.msra.mxu1 (!%p1023_p6), %v1498_v38 }
 0x20f   : > { %1500 = vmatprep.subr.bf16.mxu1 (!%p1023_p6), %v1577_v63 }
 0x212   : > { %1502 = vmatpush3.bf16.msra.mxu1 (!%p1023_p6), %v1501_v42 }
 0x213   : > { %1503 = vmatprep.subr.bf16.mxu1 (!%p1023_p6), %v1577_v63 }
 0x216   : > { %1505 = vmatpush3.bf16.msra.mxu1 (!%p1023_p6), %v1504_v45 }
 0x2cc   : > { %v672_v51 = vpop.f32.mrb[2].mxu1 }
 0x2cd   : > { %v676_v52 = vadd.f32 %v672_v51, %v437_v50  ;;  %v1252_v53 = vpop.f32.mrb[3].mxu1  ;;  %v1025_v51 = vld [vmem:[%s1941_s7] ss:$0 sm:$0xff] (!%p1023_p6) }
 0x2cf   : > { %1541 = vtanh.f32 %v676_v52 }
 0x2d9   : > { %v1542_v54 = vpop.eup %1541 }
 0x2da   : > { %1286 = vmatmul.mubr.f32.vlgmr.msra.gmra.mrb[6].mxu0 %v1542_v54 }
 0x2db   : > { %1320 = vmatprep.mubr.msk.f32.mxu0 (!%p1023_p6), %vm1578_vm2, %v1579_v2  ;;  %1460 = vmatpush3.bf16.msra.mxu0 (!%p1023_p6), %v1459_v0 }
 0x2dc   : > { %1461 = vmatprep.subr.bf16.mxu0 (!%p1023_p6), %v1577_v63 }
 0x2df   : > { %1463 = vmatpush3.bf16.msra.mxu0 (!%p1023_p6), %v1462_v3 }
 0x2e0   : > { %1464 = vmatprep.subr.bf16.mxu0 (!%p1023_p6), %v1577_v63 }
 0x2e3   : > { %1466 = vmatpush3.bf16.msra.mxu0 (!%p1023_p6), %v1465_v11 }
 0x2e4   : > { %1467 = vmatprep.subr.bf16.mxu0 (!%p1023_p6), %v1577_v63 }
 0x2e7   : > { %1469 = vmatpush3.bf16.msra.mxu0 (!%p1023_p6), %v1468_v17 }
 0x2e8   : > { %1470 = vmatprep.subr.bf16.mxu0 (!%p1023_p6), %v1577_v63 }
 0x2eb   : > { %1472 = vmatpush3.bf16.msra.mxu0 (!%p1023_p6), %v1471_v23 }
 0x2ec   : > { %1473 = vmatprep.subr.bf16.mxu0 (!%p1023_p6), %v1577_v63 }
 0x2ef   : > { %1475 = vmatpush3.bf16.msra.mxu0 (!%p1023_p6), %v1474_v29 }
 0x2f0   : > { %1476 = vmatprep.subr.bf16.mxu0 (!%p1023_p6), %v1577_v63 }
 0x2f3   : > { %1478 = vmatpush3.bf16.msra.mxu0 (!%p1023_p6), %v1477_v35 }
 0x2f4   : > { %1479 = vmatprep.subr.bf16.mxu0 (!%p1023_p6), %v1577_v63 }
 0x2f7   : > { %1481 = vmatpush3.bf16.msra.mxu0 (!%p1023_p6), %v1480_v41 }
 0x3ad   : > { %v744_v56 = vpop.f32.mrb[6].mxu0 }
 0x3ae   : > { %v748_v57 = vadd.f32 %v744_v56, %v442_v55  ;;  %v1287_v58 = vpop.f32.mrb[7].mxu0 }
 0x3b0   : > { %1543 = vtanh.f32 %v748_v57 }
 0x3b5   : > { %754 = sbr.rel (%p1023_p6) target bundleno = 1412 (0x584), region = 60 }
 0x3ba   : > { %v1799_v59 = vpop.eup %1543 }
 0x3bb   : > { %750 = vst [vmem:[#allocation2] sm:$0xff] %v1799_v59  ;;  %1321 = vmatmul.mubr.f32.vlgmr.msra.gmra.mrb[0].mxu0 (!%p1023_p6), %v1799_v59 }
 0x48e   : > { %v844_v47 = vpop.f32.mrb[0].mxu0 }
 0x48f   : > { %v845_v48 = vadd.f32 %v1024_v46, %v844_v47  ;;  %v1322_v49 = vpop.f32.mrb[1].mxu0 }
 0x491   : > { %v848_v50 = vmax.f32 %v845_v48, 0.0 }
 0x493   : > { %1356 = vmatmul.mubr.f32.vlgmr.msra.gmra.mrb[0].mxu1 %v848_v50 }
 0x566   : > { %v938_v52 = vpop.f32.mrb[0].mxu1 }
 0x567   : > { %v939_v53 = vadd.f32 %v1025_v51, %v938_v52  ;;  %v1357_v54 = vpop.f32.mrb[1].mxu1 }
 0x569   : > { %v1026_v55 = vmul.f32 -1.442695, %v939_v53 }
 0x56b   : > { %1545 = vpow2.f32 %v1026_v55 }
 0x575   : > { %v1546_v56 = vpop.eup %1545 }
 0x576   : > { %v945_v57 = vadd.f32 1.0, %v1546_v56 }
 0x578   : > { %1547 = vrcp.f32 %v945_v57 }
 0x582   : > { %v1548_v58 = vpop.eup %1547 }
 0x583   : > { %948 = vst [vmem:[%s1942_s8] sm:$0xff] %v1548_v58 }
 0x584 PF: > { %s18_s29 = sadd.s32 1, %s1571_s29   ;;  %s1943_s27 = smov %s1567_s28 }
 0x585   : > { %p15_p7 = scmp.ge.s32.totalorder %s18_s29, 4   ;;  %s1944_s28 = smov %s1946_s30 }
 0x587   :  { %17 = sbr.rel (!%p15_p7) target bundleno = 2 (0x2), region = 90 }

</bundles_post_ra>
